<compile_context>
chip_gen: v7x
topology: tpu7x:2x2x1
jax: 0.10.0
libtpu: 0.0.40
codegen_flags: <defaults>
</compile_context>

<pallas_src>
import numpy as np
import jax
import jax.numpy as jnp
from jax.experimental import pallas as pl
from jax.experimental.pallas import tpu as pltpu


# ----------------------------- Pallas kernel (hot path) -----------------------------

def _circuit_kernel(cs_ref, x_ref, out_ref):
    # cs_ref : SMEM (12,) f32  -> [c1..c6, s1..s6] with c_k = cos(theta_k/2), s_k = sin(theta_k/2)
    # x_ref  : VMEM (1, 16) f32 input state (row, basis index on the lane axis)
    # out_ref: SMEM (1, 1) f32 expectation value
    c1, c2, c3, c4, c5, c6 = (cs_ref[i] for i in range(6))
    s1, s2, s3, s4, s5, s6 = (cs_ref[6 + i] for i in range(6))

    sub = jax.lax.broadcasted_iota(jnp.int32, (16, 16), 0)   # sublane index
    lane = jax.lax.broadcasted_iota(jnp.int32, (16, 16), 1)  # lane index

    # qubit 0 is the most-significant bit of the 4-bit basis index
    def bit(v, q):
        return (v >> (3 - q)) & 1

    def f_id(new, old, q):
        return jnp.where(bit(new, q) == bit(old, q), 1.0, 0.0)

    def f_x(new, old, q):
        return jnp.where(bit(new, q) != bit(old, q), 1.0, 0.0)

    def f_ry(new, old, q, c, s):
        # RY = [[c, -s], [s, c]]  ->  entry[new, old] = c if new==old else s*(new-old)
        bn = bit(new, q)
        bo = bit(old, q)
        return jnp.where(bn == bo, c, s * (bn - bo).astype(jnp.float32))

    def f_cnot(new, old, qc, qt):
        # CNOT(control qc, target qt): nonzero iff control preserved and
        # target_new == target_old XOR control_old.
        bnc, boc = bit(new, qc), bit(old, qc)
        bnt, bot = bit(new, qt), bit(old, qt)
        ok = (bnc == boc) & (bnt == (bot ^ boc))
        return jnp.where(ok, 1.0, 0.0)

    # Layer matrices as products of per-qubit Kronecker factors.  `new`/`old`
    # are 16x16 iota index arrays; which physical axis (sublane vs lane) they
    # live on is chosen per step below so no transposes are ever needed.
    def layer1(new, old):   # X (x) X (x) RY(t1) (x) RY(t2)
        return (f_x(new, old, 0) * f_x(new, old, 1)
                * f_ry(new, old, 2, c1, s1) * f_ry(new, old, 3, c2, s2))

    def layer2(new, old):   # RY(t3) (x) RY(t4) (x) CNOT(q2->q3)
        return (f_ry(new, old, 0, c3, s3) * f_ry(new, old, 1, c4, s4)
                * f_cnot(new, old, 2, 3))

    def layer3(new, old):   # CNOT(q0->q1) (x) I (x) RY(t5)
        return (f_cnot(new, old, 0, 1) * f_id(new, old, 2)
                * f_ry(new, old, 3, c5, s5))

    def layer4(new, old):   # I (x) RY(t6) (x) I (x) I
        return (f_id(new, old, 0) * f_ry(new, old, 1, c6, s6)
                * f_id(new, old, 2) * f_id(new, old, 3))

    def layer5(new, old):   # qubit-permuted I (x) I (x) CNOT == CNOT(control q1, target q3)
        return f_id(new, old, 0) * f_id(new, old, 2) * f_cnot(new, old, 1, 3)

    x = x_ref[...]  # (1, 16) row

    # Apply L1..L5 as VPU broadcast-multiply + XLU axis-reduce mat-vecs,
    # alternating row <-> column state layout.
    # step 1: old index on lanes, new index on sublanes  -> column (16, 1)
    v = jnp.sum(layer1(sub, lane) * x, axis=1, keepdims=True)
    # step 2: old index on sublanes, new index on lanes  -> row (1, 16)
    v = jnp.sum(layer2(lane, sub) * v, axis=0, keepdims=True)
    # step 3 -> column
    v = jnp.sum(layer3(sub, lane) * v, axis=1, keepdims=True)
    # step 4 -> row
    v = jnp.sum(layer4(lane, sub) * v, axis=0, keepdims=True)
    # step 5 -> column = alpha
    alpha = jnp.sum(layer5(sub, lane) * v, axis=1, keepdims=True)  # (16, 1)

    # M = I(x)I(x)I(x)Z is diagonal with alternating +1/-1.  alpha is real,
    # so <alpha|M|alpha> = sum_i sign_i * alpha_i^2 (no conjugate needed).
    idx = jax.lax.broadcasted_iota(jnp.int32, (16, 1), 0)
    sign = (1 - 2 * (idx & 1)).astype(jnp.float32)
    out_ref[0, 0] = jnp.sum(alpha * alpha * sign)


# ----------------------------- forward wrapper -----------------------------

def quantum_circuit_forward(thetas, input_state):
    thetas = jnp.asarray(thetas, jnp.float32).reshape(6)
    half = thetas * 0.5
    cs = jnp.concatenate([jnp.cos(half), jnp.sin(half)])          # (12,) f32
    x_row = jnp.asarray(input_state, jnp.float32).reshape(1, 16)  # lane-dense row

    out = pl.pallas_call(
        _circuit_kernel,
        out_shape=jax.ShapeDtypeStruct((1, 1), jnp.float32),
        in_specs=[
            pl.BlockSpec(memory_space=pltpu.MemorySpace.SMEM),  # cos/sin scalars
            pl.BlockSpec(memory_space=pltpu.MemorySpace.VMEM),  # state row
        ],
        out_specs=pl.BlockSpec(memory_space=pltpu.MemorySpace.SMEM),
        cost_estimate=pl.CostEstimate(flops=8192, transcendentals=0,
                                      bytes_accessed=(12 + 16 + 1) * 4),
    )(cs, x_row)
    return out

# TODO(synk): if many (theta, state) pairs are ever evaluated, batch the state
# to a lane-dense (16, B) layout (B a multiple of 128) with a "parallel" grid
# axis (sharded across both TensorCores on v7x); this single-shot path is far
# below the architecture floor by design.


# ----------------------------- numpy float64 reference -----------------------------

def _reference_forward(thetas, input_state):
    t = np.asarray(thetas, np.float64)
    x = np.asarray(input_state, np.float64).reshape(16, 1)
    I2 = np.eye(2)
    X2 = np.array([[0.0, 1.0], [1.0, 0.0]])
    CN = np.array([[1, 0, 0, 0], [0, 1, 0, 0], [0, 0, 0, 1], [0, 0, 1, 0]], np.float64)
    Z2 = np.diag([1.0, -1.0])

    def ry(th):
        c, s = np.cos(th / 2.0), np.sin(th / 2.0)
        return np.array([[c, -s], [s, c]])

    k = np.kron
    L1 = k(k(k(X2, X2), ry(t[0])), ry(t[1]))
    L2 = k(k(ry(t[2]), ry(t[3])), CN)
    L3 = k(k(CN, I2), ry(t[4]))
    L4 = k(k(k(I2, ry(t[5])), I2), I2)
    L5 = k(k(I2, I2), CN).reshape((2,) * 8)
    L5 = np.transpose(L5, (0, 2, 1, 3, 4, 6, 5, 7)).reshape(16, 16)
    U = L5 @ L4 @ L3 @ L2 @ L1
    alpha = U @ x
    M = k(k(k(I2, I2), I2), Z2)
    return (alpha.T @ M @ alpha).astype(np.float32)


if __name__ == "__main__":
    key = jax.random.PRNGKey(0)
    k_theta, k_state = jax.random.split(key)

    # six theta parameters (the module has nn.Parameter(torch.rand(1)) x 6)
    thetas = jax.random.uniform(k_theta, (6,), dtype=jnp.float32)

    # deterministic normalized 4-qubit input state, column vector (16, 1)
    raw = jax.random.uniform(k_state, (16, 1), dtype=jnp.float32)
    input_state = raw / jnp.linalg.norm(raw)

    out = jax.jit(quantum_circuit_forward)(thetas, input_state)
    out = jax.block_until_ready(out)

    ref = _reference_forward(np.asarray(thetas), np.asarray(input_state))
    np.testing.assert_allclose(np.asarray(out), ref, rtol=1e-5, atol=1e-5)

    print("KERNEL_OK")
</pallas_src>

<mosaic_0001>
module attributes {stable_mosaic.version = 11 : i64} {
  func.func @_circuit_kernel(%arg0: memref<12xf32, #tpu.memory_space<smem>>, %arg1: memref<1x16xf32, #tpu.memory_space<vmem>>, %arg2: memref<1x1xf32, #tpu.memory_space<smem>>) attributes {dimension_semantics = [], scalar_prefetch = 0 : i64, scratch_operands = 0 : i64, tpu.core_type = #tpu.core_type<tc>} {
    %c0 = arith.constant 0 : index
    %0 = memref.load %arg0[%c0] : memref<12xf32, #tpu.memory_space<smem>>
    %c1 = arith.constant 1 : index
    %1 = memref.load %arg0[%c1] : memref<12xf32, #tpu.memory_space<smem>>
    %c2 = arith.constant 2 : index
    %2 = memref.load %arg0[%c2] : memref<12xf32, #tpu.memory_space<smem>>
    %c3 = arith.constant 3 : index
    %3 = memref.load %arg0[%c3] : memref<12xf32, #tpu.memory_space<smem>>
    %c4 = arith.constant 4 : index
    %4 = memref.load %arg0[%c4] : memref<12xf32, #tpu.memory_space<smem>>
    %c5 = arith.constant 5 : index
    %5 = memref.load %arg0[%c5] : memref<12xf32, #tpu.memory_space<smem>>
    %c6 = arith.constant 6 : index
    %6 = memref.load %arg0[%c6] : memref<12xf32, #tpu.memory_space<smem>>
    %c7 = arith.constant 7 : index
    %7 = memref.load %arg0[%c7] : memref<12xf32, #tpu.memory_space<smem>>
    %c8 = arith.constant 8 : index
    %8 = memref.load %arg0[%c8] : memref<12xf32, #tpu.memory_space<smem>>
    %c9 = arith.constant 9 : index
    %9 = memref.load %arg0[%c9] : memref<12xf32, #tpu.memory_space<smem>>
    %c10 = arith.constant 10 : index
    %10 = memref.load %arg0[%c10] : memref<12xf32, #tpu.memory_space<smem>>
    %c11 = arith.constant 11 : index
    %11 = memref.load %arg0[%c11] : memref<12xf32, #tpu.memory_space<smem>>
    %12 = tpu.iota {dimensions = array<i32: 0>} : vector<16x16xi32>
    %13 = tpu.iota {dimensions = array<i32: 1>} : vector<16x16xi32>
    %c0_0 = arith.constant 0 : index
    %c0_1 = arith.constant 0 : index
    %14 = vector.load %arg1[%c0_0, %c0_1] : memref<1x16xf32, #tpu.memory_space<vmem>>, vector<1x16xf32>
    %c3_i32 = arith.constant 3 : i32
    %15 = vector.broadcast %c3_i32 : i32 to vector<16x16xi32>
    %16 = arith.shrsi %12, %15 : vector<16x16xi32>
    %c1_i32 = arith.constant 1 : i32
    %17 = vector.broadcast %c1_i32 : i32 to vector<16x16xi32>
    %18 = arith.andi %16, %17 : vector<16x16xi32>
    %c3_i32_2 = arith.constant 3 : i32
    %19 = vector.broadcast %c3_i32_2 : i32 to vector<16x16xi32>
    %20 = arith.shrsi %13, %19 : vector<16x16xi32>
    %c1_i32_3 = arith.constant 1 : i32
    %21 = vector.broadcast %c1_i32_3 : i32 to vector<16x16xi32>
    %22 = arith.andi %20, %21 : vector<16x16xi32>
    %23 = arith.cmpi ne, %18, %22 : vector<16x16xi32>
    %cst = arith.constant 1.000000e+00 : f32
    %cst_4 = arith.constant 0.000000e+00 : f32
    %24 = vector.broadcast %cst : f32 to vector<16x16xf32>
    %25 = vector.broadcast %cst_4 : f32 to vector<16x16xf32>
    %26 = arith.select %23, %24, %25 : vector<16x16xi1>, vector<16x16xf32>
    %c2_i32 = arith.constant 2 : i32
    %27 = vector.broadcast %c2_i32 : i32 to vector<16x16xi32>
    %28 = arith.shrsi %12, %27 : vector<16x16xi32>
    %c1_i32_5 = arith.constant 1 : i32
    %29 = vector.broadcast %c1_i32_5 : i32 to vector<16x16xi32>
    %30 = arith.andi %28, %29 : vector<16x16xi32>
    %c2_i32_6 = arith.constant 2 : i32
    %31 = vector.broadcast %c2_i32_6 : i32 to vector<16x16xi32>
    %32 = arith.shrsi %13, %31 : vector<16x16xi32>
    %c1_i32_7 = arith.constant 1 : i32
    %33 = vector.broadcast %c1_i32_7 : i32 to vector<16x16xi32>
    %34 = arith.andi %32, %33 : vector<16x16xi32>
    %35 = arith.cmpi ne, %30, %34 : vector<16x16xi32>
    %cst_8 = arith.constant 1.000000e+00 : f32
    %cst_9 = arith.constant 0.000000e+00 : f32
    %36 = vector.broadcast %cst_8 : f32 to vector<16x16xf32>
    %37 = vector.broadcast %cst_9 : f32 to vector<16x16xf32>
    %38 = arith.select %35, %36, %37 : vector<16x16xi1>, vector<16x16xf32>
    %39 = arith.mulf %26, %38 : vector<16x16xf32>
    %c1_i32_10 = arith.constant 1 : i32
    %40 = vector.broadcast %c1_i32_10 : i32 to vector<16x16xi32>
    %41 = arith.shrsi %12, %40 : vector<16x16xi32>
    %c1_i32_11 = arith.constant 1 : i32
    %42 = vector.broadcast %c1_i32_11 : i32 to vector<16x16xi32>
    %43 = arith.andi %41, %42 : vector<16x16xi32>
    %c1_i32_12 = arith.constant 1 : i32
    %44 = vector.broadcast %c1_i32_12 : i32 to vector<16x16xi32>
    %45 = arith.shrsi %13, %44 : vector<16x16xi32>
    %c1_i32_13 = arith.constant 1 : i32
    %46 = vector.broadcast %c1_i32_13 : i32 to vector<16x16xi32>
    %47 = arith.andi %45, %46 : vector<16x16xi32>
    %48 = arith.cmpi eq, %43, %47 : vector<16x16xi32>
    %49 = arith.subi %43, %47 : vector<16x16xi32>
    %50 = arith.sitofp %49 : vector<16x16xi32> to vector<16x16xf32>
    %51 = vector.broadcast %6 : f32 to vector<16x16xf32>
    %52 = arith.mulf %51, %50 : vector<16x16xf32>
    %53 = vector.broadcast %0 : f32 to vector<16x16xf32>
    %54 = arith.select %48, %53, %52 : vector<16x16xi1>, vector<16x16xf32>
    %55 = arith.mulf %39, %54 : vector<16x16xf32>
    %c0_i32 = arith.constant 0 : i32
    %56 = vector.broadcast %c0_i32 : i32 to vector<16x16xi32>
    %57 = arith.shrsi %12, %56 : vector<16x16xi32>
    %c1_i32_14 = arith.constant 1 : i32
    %58 = vector.broadcast %c1_i32_14 : i32 to vector<16x16xi32>
    %59 = arith.andi %57, %58 : vector<16x16xi32>
    %c0_i32_15 = arith.constant 0 : i32
    %60 = vector.broadcast %c0_i32_15 : i32 to vector<16x16xi32>
    %61 = arith.shrsi %13, %60 : vector<16x16xi32>
    %c1_i32_16 = arith.constant 1 : i32
    %62 = vector.broadcast %c1_i32_16 : i32 to vector<16x16xi32>
    %63 = arith.andi %61, %62 : vector<16x16xi32>
    %64 = arith.cmpi eq, %59, %63 : vector<16x16xi32>
    %65 = arith.subi %59, %63 : vector<16x16xi32>
    %66 = arith.sitofp %65 : vector<16x16xi32> to vector<16x16xf32>
    %67 = vector.broadcast %7 : f32 to vector<16x16xf32>
    %68 = arith.mulf %67, %66 : vector<16x16xf32>
    %69 = vector.broadcast %1 : f32 to vector<16x16xf32>
    %70 = arith.select %64, %69, %68 : vector<16x16xi1>, vector<16x16xf32>
    %71 = arith.mulf %55, %70 : vector<16x16xf32>
    %72 = vector.broadcast %14 : vector<1x16xf32> to vector<16x16xf32>
    %73 = arith.mulf %71, %72 : vector<16x16xf32>
    %cst_17 = arith.constant dense<0.000000e+00> : vector<16xf32>
    %74 = vector.multi_reduction <add>, %73, %cst_17 [1] : vector<16x16xf32> to vector<16xf32>
    %75 = vector.shape_cast %74 : vector<16xf32> to vector<16x1xf32>
    %c3_i32_18 = arith.constant 3 : i32
    %76 = vector.broadcast %c3_i32_18 : i32 to vector<16x16xi32>
    %77 = arith.shrsi %13, %76 : vector<16x16xi32>
    %c1_i32_19 = arith.constant 1 : i32
    %78 = vector.broadcast %c1_i32_19 : i32 to vector<16x16xi32>
    %79 = arith.andi %77, %78 : vector<16x16xi32>
    %c3_i32_20 = arith.constant 3 : i32
    %80 = vector.broadcast %c3_i32_20 : i32 to vector<16x16xi32>
    %81 = arith.shrsi %12, %80 : vector<16x16xi32>
    %c1_i32_21 = arith.constant 1 : i32
    %82 = vector.broadcast %c1_i32_21 : i32 to vector<16x16xi32>
    %83 = arith.andi %81, %82 : vector<16x16xi32>
    %84 = arith.cmpi eq, %79, %83 : vector<16x16xi32>
    %85 = arith.subi %79, %83 : vector<16x16xi32>
    %86 = arith.sitofp %85 : vector<16x16xi32> to vector<16x16xf32>
    %87 = vector.broadcast %8 : f32 to vector<16x16xf32>
    %88 = arith.mulf %87, %86 : vector<16x16xf32>
    %89 = vector.broadcast %2 : f32 to vector<16x16xf32>
    %90 = arith.select %84, %89, %88 : vector<16x16xi1>, vector<16x16xf32>
    %c2_i32_22 = arith.constant 2 : i32
    %91 = vector.broadcast %c2_i32_22 : i32 to vector<16x16xi32>
    %92 = arith.shrsi %13, %91 : vector<16x16xi32>
    %c1_i32_23 = arith.constant 1 : i32
    %93 = vector.broadcast %c1_i32_23 : i32 to vector<16x16xi32>
    %94 = arith.andi %92, %93 : vector<16x16xi32>
    %c2_i32_24 = arith.constant 2 : i32
    %95 = vector.broadcast %c2_i32_24 : i32 to vector<16x16xi32>
    %96 = arith.shrsi %12, %95 : vector<16x16xi32>
    %c1_i32_25 = arith.constant 1 : i32
    %97 = vector.broadcast %c1_i32_25 : i32 to vector<16x16xi32>
    %98 = arith.andi %96, %97 : vector<16x16xi32>
    %99 = arith.cmpi eq, %94, %98 : vector<16x16xi32>
    %100 = arith.subi %94, %98 : vector<16x16xi32>
    %101 = arith.sitofp %100 : vector<16x16xi32> to vector<16x16xf32>
    %102 = vector.broadcast %9 : f32 to vector<16x16xf32>
    %103 = arith.mulf %102, %101 : vector<16x16xf32>
    %104 = vector.broadcast %3 : f32 to vector<16x16xf32>
    %105 = arith.select %99, %104, %103 : vector<16x16xi1>, vector<16x16xf32>
    %106 = arith.mulf %90, %105 : vector<16x16xf32>
    %c1_i32_26 = arith.constant 1 : i32
    %107 = vector.broadcast %c1_i32_26 : i32 to vector<16x16xi32>
    %108 = arith.shrsi %13, %107 : vector<16x16xi32>
    %c1_i32_27 = arith.constant 1 : i32
    %109 = vector.broadcast %c1_i32_27 : i32 to vector<16x16xi32>
    %110 = arith.andi %108, %109 : vector<16x16xi32>
    %c1_i32_28 = arith.constant 1 : i32
    %111 = vector.broadcast %c1_i32_28 : i32 to vector<16x16xi32>
    %112 = arith.shrsi %12, %111 : vector<16x16xi32>
    %c1_i32_29 = arith.constant 1 : i32
    %113 = vector.broadcast %c1_i32_29 : i32 to vector<16x16xi32>
    %114 = arith.andi %112, %113 : vector<16x16xi32>
    %c0_i32_30 = arith.constant 0 : i32
    %115 = vector.broadcast %c0_i32_30 : i32 to vector<16x16xi32>
    %116 = arith.shrsi %13, %115 : vector<16x16xi32>
    %c1_i32_31 = arith.constant 1 : i32
    %117 = vector.broadcast %c1_i32_31 : i32 to vector<16x16xi32>
    %118 = arith.andi %116, %117 : vector<16x16xi32>
    %c0_i32_32 = arith.constant 0 : i32
    %119 = vector.broadcast %c0_i32_32 : i32 to vector<16x16xi32>
    %120 = arith.shrsi %12, %119 : vector<16x16xi32>
    %c1_i32_33 = arith.constant 1 : i32
    %121 = vector.broadcast %c1_i32_33 : i32 to vector<16x16xi32>
    %122 = arith.andi %120, %121 : vector<16x16xi32>
    %123 = arith.cmpi eq, %110, %114 : vector<16x16xi32>
    %124 = arith.xori %122, %114 : vector<16x16xi32>
    %125 = arith.cmpi eq, %118, %124 : vector<16x16xi32>
    %126 = arith.andi %123, %125 : vector<16x16xi1>
    %cst_34 = arith.constant 1.000000e+00 : f32
    %cst_35 = arith.constant 0.000000e+00 : f32
    %127 = vector.broadcast %cst_34 : f32 to vector<16x16xf32>
    %128 = vector.broadcast %cst_35 : f32 to vector<16x16xf32>
    %129 = arith.select %126, %127, %128 : vector<16x16xi1>, vector<16x16xf32>
    %130 = arith.mulf %106, %129 : vector<16x16xf32>
    %131 = vector.broadcast %75 : vector<16x1xf32> to vector<16x16xf32>
    %132 = arith.mulf %130, %131 : vector<16x16xf32>
    %cst_36 = arith.constant dense<0.000000e+00> : vector<16xf32>
    %133 = vector.multi_reduction <add>, %132, %cst_36 [0] : vector<16x16xf32> to vector<16xf32>
    %134 = vector.shape_cast %133 : vector<16xf32> to vector<1x16xf32>
    %c3_i32_37 = arith.constant 3 : i32
    %135 = vector.broadcast %c3_i32_37 : i32 to vector<16x16xi32>
    %136 = arith.shrsi %12, %135 : vector<16x16xi32>
    %c1_i32_38 = arith.constant 1 : i32
    %137 = vector.broadcast %c1_i32_38 : i32 to vector<16x16xi32>
    %138 = arith.andi %136, %137 : vector<16x16xi32>
    %c3_i32_39 = arith.constant 3 : i32
    %139 = vector.broadcast %c3_i32_39 : i32 to vector<16x16xi32>
    %140 = arith.shrsi %13, %139 : vector<16x16xi32>
    %c1_i32_40 = arith.constant 1 : i32
    %141 = vector.broadcast %c1_i32_40 : i32 to vector<16x16xi32>
    %142 = arith.andi %140, %141 : vector<16x16xi32>
    %c2_i32_41 = arith.constant 2 : i32
    %143 = vector.broadcast %c2_i32_41 : i32 to vector<16x16xi32>
    %144 = arith.shrsi %12, %143 : vector<16x16xi32>
    %c1_i32_42 = arith.constant 1 : i32
    %145 = vector.broadcast %c1_i32_42 : i32 to vector<16x16xi32>
    %146 = arith.andi %144, %145 : vector<16x16xi32>
    %c2_i32_43 = arith.constant 2 : i32
    %147 = vector.broadcast %c2_i32_43 : i32 to vector<16x16xi32>
    %148 = arith.shrsi %13, %147 : vector<16x16xi32>
    %c1_i32_44 = arith.constant 1 : i32
    %149 = vector.broadcast %c1_i32_44 : i32 to vector<16x16xi32>
    %150 = arith.andi %148, %149 : vector<16x16xi32>
    %151 = arith.cmpi eq, %138, %142 : vector<16x16xi32>
    %152 = arith.xori %150, %142 : vector<16x16xi32>
    %153 = arith.cmpi eq, %146, %152 : vector<16x16xi32>
    %154 = arith.andi %151, %153 : vector<16x16xi1>
    %cst_45 = arith.constant 1.000000e+00 : f32
    %cst_46 = arith.constant 0.000000e+00 : f32
    %155 = vector.broadcast %cst_45 : f32 to vector<16x16xf32>
    %156 = vector.broadcast %cst_46 : f32 to vector<16x16xf32>
    %157 = arith.select %154, %155, %156 : vector<16x16xi1>, vector<16x16xf32>
    %c1_i32_47 = arith.constant 1 : i32
    %158 = vector.broadcast %c1_i32_47 : i32 to vector<16x16xi32>
    %159 = arith.shrsi %12, %158 : vector<16x16xi32>
    %c1_i32_48 = arith.constant 1 : i32
    %160 = vector.broadcast %c1_i32_48 : i32 to vector<16x16xi32>
    %161 = arith.andi %159, %160 : vector<16x16xi32>
    %c1_i32_49 = arith.constant 1 : i32
    %162 = vector.broadcast %c1_i32_49 : i32 to vector<16x16xi32>
    %163 = arith.shrsi %13, %162 : vector<16x16xi32>
    %c1_i32_50 = arith.constant 1 : i32
    %164 = vector.broadcast %c1_i32_50 : i32 to vector<16x16xi32>
    %165 = arith.andi %163, %164 : vector<16x16xi32>
    %166 = arith.cmpi eq, %161, %165 : vector<16x16xi32>
    %cst_51 = arith.constant 1.000000e+00 : f32
    %cst_52 = arith.constant 0.000000e+00 : f32
    %167 = vector.broadcast %cst_51 : f32 to vector<16x16xf32>
    %168 = vector.broadcast %cst_52 : f32 to vector<16x16xf32>
    %169 = arith.select %166, %167, %168 : vector<16x16xi1>, vector<16x16xf32>
    %170 = arith.mulf %157, %169 : vector<16x16xf32>
    %c0_i32_53 = arith.constant 0 : i32
    %171 = vector.broadcast %c0_i32_53 : i32 to vector<16x16xi32>
    %172 = arith.shrsi %12, %171 : vector<16x16xi32>
    %c1_i32_54 = arith.constant 1 : i32
    %173 = vector.broadcast %c1_i32_54 : i32 to vector<16x16xi32>
    %174 = arith.andi %172, %173 : vector<16x16xi32>
    %c0_i32_55 = arith.constant 0 : i32
    %175 = vector.broadcast %c0_i32_55 : i32 to vector<16x16xi32>
    %176 = arith.shrsi %13, %175 : vector<16x16xi32>
    %c1_i32_56 = arith.constant 1 : i32
    %177 = vector.broadcast %c1_i32_56 : i32 to vector<16x16xi32>
    %178 = arith.andi %176, %177 : vector<16x16xi32>
    %179 = arith.cmpi eq, %174, %178 : vector<16x16xi32>
    %180 = arith.subi %174, %178 : vector<16x16xi32>
    %181 = arith.sitofp %180 : vector<16x16xi32> to vector<16x16xf32>
    %182 = vector.broadcast %10 : f32 to vector<16x16xf32>
    %183 = arith.mulf %182, %181 : vector<16x16xf32>
    %184 = vector.broadcast %4 : f32 to vector<16x16xf32>
    %185 = arith.select %179, %184, %183 : vector<16x16xi1>, vector<16x16xf32>
    %186 = arith.mulf %170, %185 : vector<16x16xf32>
    %187 = vector.broadcast %134 : vector<1x16xf32> to vector<16x16xf32>
    %188 = arith.mulf %186, %187 : vector<16x16xf32>
    %cst_57 = arith.constant dense<0.000000e+00> : vector<16xf32>
    %189 = vector.multi_reduction <add>, %188, %cst_57 [1] : vector<16x16xf32> to vector<16xf32>
    %190 = vector.shape_cast %189 : vector<16xf32> to vector<16x1xf32>
    %c3_i32_58 = arith.constant 3 : i32
    %191 = vector.broadcast %c3_i32_58 : i32 to vector<16x16xi32>
    %192 = arith.shrsi %13, %191 : vector<16x16xi32>
    %c1_i32_59 = arith.constant 1 : i32
    %193 = vector.broadcast %c1_i32_59 : i32 to vector<16x16xi32>
    %194 = arith.andi %192, %193 : vector<16x16xi32>
    %c3_i32_60 = arith.constant 3 : i32
    %195 = vector.broadcast %c3_i32_60 : i32 to vector<16x16xi32>
    %196 = arith.shrsi %12, %195 : vector<16x16xi32>
    %c1_i32_61 = arith.constant 1 : i32
    %197 = vector.broadcast %c1_i32_61 : i32 to vector<16x16xi32>
    %198 = arith.andi %196, %197 : vector<16x16xi32>
    %199 = arith.cmpi eq, %194, %198 : vector<16x16xi32>
    %cst_62 = arith.constant 1.000000e+00 : f32
    %cst_63 = arith.constant 0.000000e+00 : f32
    %200 = vector.broadcast %cst_62 : f32 to vector<16x16xf32>
    %201 = vector.broadcast %cst_63 : f32 to vector<16x16xf32>
    %202 = arith.select %199, %200, %201 : vector<16x16xi1>, vector<16x16xf32>
    %c2_i32_64 = arith.constant 2 : i32
    %203 = vector.broadcast %c2_i32_64 : i32 to vector<16x16xi32>
    %204 = arith.shrsi %13, %203 : vector<16x16xi32>
    %c1_i32_65 = arith.constant 1 : i32
    %205 = vector.broadcast %c1_i32_65 : i32 to vector<16x16xi32>
    %206 = arith.andi %204, %205 : vector<16x16xi32>
    %c2_i32_66 = arith.constant 2 : i32
    %207 = vector.broadcast %c2_i32_66 : i32 to vector<16x16xi32>
    %208 = arith.shrsi %12, %207 : vector<16x16xi32>
    %c1_i32_67 = arith.constant 1 : i32
    %209 = vector.broadcast %c1_i32_67 : i32 to vector<16x16xi32>
    %210 = arith.andi %208, %209 : vector<16x16xi32>
    %211 = arith.cmpi eq, %206, %210 : vector<16x16xi32>
    %212 = arith.subi %206, %210 : vector<16x16xi32>
    %213 = arith.sitofp %212 : vector<16x16xi32> to vector<16x16xf32>
    %214 = vector.broadcast %11 : f32 to vector<16x16xf32>
    %215 = arith.mulf %214, %213 : vector<16x16xf32>
    %216 = vector.broadcast %5 : f32 to vector<16x16xf32>
    %217 = arith.select %211, %216, %215 : vector<16x16xi1>, vector<16x16xf32>
    %218 = arith.mulf %202, %217 : vector<16x16xf32>
    %c1_i32_68 = arith.constant 1 : i32
    %219 = vector.broadcast %c1_i32_68 : i32 to vector<16x16xi32>
    %220 = arith.shrsi %13, %219 : vector<16x16xi32>
    %c1_i32_69 = arith.constant 1 : i32
    %221 = vector.broadcast %c1_i32_69 : i32 to vector<16x16xi32>
    %222 = arith.andi %220, %221 : vector<16x16xi32>
    %c1_i32_70 = arith.constant 1 : i32
    %223 = vector.broadcast %c1_i32_70 : i32 to vector<16x16xi32>
    %224 = arith.shrsi %12, %223 : vector<16x16xi32>
    %c1_i32_71 = arith.constant 1 : i32
    %225 = vector.broadcast %c1_i32_71 : i32 to vector<16x16xi32>
    %226 = arith.andi %224, %225 : vector<16x16xi32>
    %227 = arith.cmpi eq, %222, %226 : vector<16x16xi32>
    %cst_72 = arith.constant 1.000000e+00 : f32
    %cst_73 = arith.constant 0.000000e+00 : f32
    %228 = vector.broadcast %cst_72 : f32 to vector<16x16xf32>
    %229 = vector.broadcast %cst_73 : f32 to vector<16x16xf32>
    %230 = arith.select %227, %228, %229 : vector<16x16xi1>, vector<16x16xf32>
    %231 = arith.mulf %218, %230 : vector<16x16xf32>
    %c0_i32_74 = arith.constant 0 : i32
    %232 = vector.broadcast %c0_i32_74 : i32 to vector<16x16xi32>
    %233 = arith.shrsi %13, %232 : vector<16x16xi32>
    %c1_i32_75 = arith.constant 1 : i32
    %234 = vector.broadcast %c1_i32_75 : i32 to vector<16x16xi32>
    %235 = arith.andi %233, %234 : vector<16x16xi32>
    %c0_i32_76 = arith.constant 0 : i32
    %236 = vector.broadcast %c0_i32_76 : i32 to vector<16x16xi32>
    %237 = arith.shrsi %12, %236 : vector<16x16xi32>
    %c1_i32_77 = arith.constant 1 : i32
    %238 = vector.broadcast %c1_i32_77 : i32 to vector<16x16xi32>
    %239 = arith.andi %237, %238 : vector<16x16xi32>
    %240 = arith.cmpi eq, %235, %239 : vector<16x16xi32>
    %cst_78 = arith.constant 1.000000e+00 : f32
    %cst_79 = arith.constant 0.000000e+00 : f32
    %241 = vector.broadcast %cst_78 : f32 to vector<16x16xf32>
    %242 = vector.broadcast %cst_79 : f32 to vector<16x16xf32>
    %243 = arith.select %240, %241, %242 : vector<16x16xi1>, vector<16x16xf32>
    %244 = arith.mulf %231, %243 : vector<16x16xf32>
    %245 = vector.broadcast %190 : vector<16x1xf32> to vector<16x16xf32>
    %246 = arith.mulf %244, %245 : vector<16x16xf32>
    %cst_80 = arith.constant dense<0.000000e+00> : vector<16xf32>
    %247 = vector.multi_reduction <add>, %246, %cst_80 [0] : vector<16x16xf32> to vector<16xf32>
    %248 = vector.shape_cast %247 : vector<16xf32> to vector<1x16xf32>
    %c3_i32_81 = arith.constant 3 : i32
    %249 = vector.broadcast %c3_i32_81 : i32 to vector<16x16xi32>
    %250 = arith.shrsi %12, %249 : vector<16x16xi32>
    %c1_i32_82 = arith.constant 1 : i32
    %251 = vector.broadcast %c1_i32_82 : i32 to vector<16x16xi32>
    %252 = arith.andi %250, %251 : vector<16x16xi32>
    %c3_i32_83 = arith.constant 3 : i32
    %253 = vector.broadcast %c3_i32_83 : i32 to vector<16x16xi32>
    %254 = arith.shrsi %13, %253 : vector<16x16xi32>
    %c1_i32_84 = arith.constant 1 : i32
    %255 = vector.broadcast %c1_i32_84 : i32 to vector<16x16xi32>
    %256 = arith.andi %254, %255 : vector<16x16xi32>
    %257 = arith.cmpi eq, %252, %256 : vector<16x16xi32>
    %cst_85 = arith.constant 1.000000e+00 : f32
    %cst_86 = arith.constant 0.000000e+00 : f32
    %258 = vector.broadcast %cst_85 : f32 to vector<16x16xf32>
    %259 = vector.broadcast %cst_86 : f32 to vector<16x16xf32>
    %260 = arith.select %257, %258, %259 : vector<16x16xi1>, vector<16x16xf32>
    %c1_i32_87 = arith.constant 1 : i32
    %261 = vector.broadcast %c1_i32_87 : i32 to vector<16x16xi32>
    %262 = arith.shrsi %12, %261 : vector<16x16xi32>
    %c1_i32_88 = arith.constant 1 : i32
    %263 = vector.broadcast %c1_i32_88 : i32 to vector<16x16xi32>
    %264 = arith.andi %262, %263 : vector<16x16xi32>
    %c1_i32_89 = arith.constant 1 : i32
    %265 = vector.broadcast %c1_i32_89 : i32 to vector<16x16xi32>
    %266 = arith.shrsi %13, %265 : vector<16x16xi32>
    %c1_i32_90 = arith.constant 1 : i32
    %267 = vector.broadcast %c1_i32_90 : i32 to vector<16x16xi32>
    %268 = arith.andi %266, %267 : vector<16x16xi32>
    %269 = arith.cmpi eq, %264, %268 : vector<16x16xi32>
    %cst_91 = arith.constant 1.000000e+00 : f32
    %cst_92 = arith.constant 0.000000e+00 : f32
    %270 = vector.broadcast %cst_91 : f32 to vector<16x16xf32>
    %271 = vector.broadcast %cst_92 : f32 to vector<16x16xf32>
    %272 = arith.select %269, %270, %271 : vector<16x16xi1>, vector<16x16xf32>
    %273 = arith.mulf %260, %272 : vector<16x16xf32>
    %c2_i32_93 = arith.constant 2 : i32
    %274 = vector.broadcast %c2_i32_93 : i32 to vector<16x16xi32>
    %275 = arith.shrsi %12, %274 : vector<16x16xi32>
    %c1_i32_94 = arith.constant 1 : i32
    %276 = vector.broadcast %c1_i32_94 : i32 to vector<16x16xi32>
    %277 = arith.andi %275, %276 : vector<16x16xi32>
    %c2_i32_95 = arith.constant 2 : i32
    %278 = vector.broadcast %c2_i32_95 : i32 to vector<16x16xi32>
    %279 = arith.shrsi %13, %278 : vector<16x16xi32>
    %c1_i32_96 = arith.constant 1 : i32
    %280 = vector.broadcast %c1_i32_96 : i32 to vector<16x16xi32>
    %281 = arith.andi %279, %280 : vector<16x16xi32>
    %c0_i32_97 = arith.constant 0 : i32
    %282 = vector.broadcast %c0_i32_97 : i32 to vector<16x16xi32>
    %283 = arith.shrsi %12, %282 : vector<16x16xi32>
    %c1_i32_98 = arith.constant 1 : i32
    %284 = vector.broadcast %c1_i32_98 : i32 to vector<16x16xi32>
    %285 = arith.andi %283, %284 : vector<16x16xi32>
    %c0_i32_99 = arith.constant 0 : i32
    %286 = vector.broadcast %c0_i32_99 : i32 to vector<16x16xi32>
    %287 = arith.shrsi %13, %286 : vector<16x16xi32>
    %c1_i32_100 = arith.constant 1 : i32
    %288 = vector.broadcast %c1_i32_100 : i32 to vector<16x16xi32>
    %289 = arith.andi %287, %288 : vector<16x16xi32>
    %290 = arith.cmpi eq, %277, %281 : vector<16x16xi32>
    %291 = arith.xori %289, %281 : vector<16x16xi32>
    %292 = arith.cmpi eq, %285, %291 : vector<16x16xi32>
    %293 = arith.andi %290, %292 : vector<16x16xi1>
    %cst_101 = arith.constant 1.000000e+00 : f32
    %cst_102 = arith.constant 0.000000e+00 : f32
    %294 = vector.broadcast %cst_101 : f32 to vector<16x16xf32>
    %295 = vector.broadcast %cst_102 : f32 to vector<16x16xf32>
    %296 = arith.select %293, %294, %295 : vector<16x16xi1>, vector<16x16xf32>
    %297 = arith.mulf %273, %296 : vector<16x16xf32>
    %298 = vector.broadcast %248 : vector<1x16xf32> to vector<16x16xf32>
    %299 = arith.mulf %297, %298 : vector<16x16xf32>
    %cst_103 = arith.constant dense<0.000000e+00> : vector<16xf32>
    %300 = vector.multi_reduction <add>, %299, %cst_103 [1] : vector<16x16xf32> to vector<16xf32>
    %301 = vector.shape_cast %300 : vector<16xf32> to vector<16x1xf32>
    %302 = tpu.iota {dimensions = array<i32: 0>} : vector<16x1xi32>
    %c1_i32_104 = arith.constant 1 : i32
    %303 = vector.broadcast %c1_i32_104 : i32 to vector<16x1xi32>
    %304 = arith.andi %302, %303 : vector<16x1xi32>
    %c2_i32_105 = arith.constant 2 : i32
    %305 = vector.broadcast %c2_i32_105 : i32 to vector<16x1xi32>
    %306 = arith.muli %305, %304 : vector<16x1xi32>
    %c1_i32_106 = arith.constant 1 : i32
    %307 = vector.broadcast %c1_i32_106 : i32 to vector<16x1xi32>
    %308 = arith.subi %307, %306 : vector<16x1xi32>
    %309 = arith.sitofp %308 : vector<16x1xi32> to vector<16x1xf32>
    %310 = arith.mulf %301, %301 : vector<16x1xf32>
    %311 = arith.mulf %310, %309 : vector<16x1xf32>
    %312 = vector.shape_cast %311 : vector<16x1xf32> to vector<1x16x1xf32>
    %cst_107 = arith.constant dense<0.000000e+00> : vector<1xf32>
    %313 = vector.multi_reduction <add>, %312, %cst_107 [1, 2] : vector<1x16x1xf32> to vector<1xf32>
    %314 = vector.shape_cast %313 : vector<1xf32> to vector<1x1x1xf32>
    %315 = vector.extract %314[0, 0, 0] : f32 from vector<1x1x1xf32>
    %c0_108 = arith.constant 0 : index
    %c0_109 = arith.constant 0 : index
    %316 = memref.load %arg2[%c0_108, %c0_109] : memref<1x1xf32, #tpu.memory_space<smem>>
    memref.store %315, %arg2[%c0_108, %c0_109] : memref<1x1xf32, #tpu.memory_space<smem>>
    return
  }
}

</mosaic_0001>

<bundles_post_ra>
// kernel: quantum_circuit_forward.1
= control target key start
LH: loop header
LB: loop body
LE: loop exit
PB: predicated region body
PF: predicated region fallthrough
CT: control target
= control target key end

     0   :  { %7 = vsyncpa [#allocation4], 0  ;;  %s620_s0 = inlined_call_operand.vmem [shape: f32[12], index: 0, kind: input, shape index: {}]   ;;  %s621_s1 = inlined_call_operand.vmem [shape: f32[1,16], index: 1, kind: input, shape index: {}]   ;;  %s622_s2 = inlined_call_operand.hbm [shape: f32[1,1], index: 2, kind: output, shape index: {}]  }
   0x1   :  { %8 = vsyncpa [#allocation3], 0  ;;  %s15_s11 = sshll.u32 %s620_s0, 4  ;;  %s16_s11 = int_to_ptr.vmem [resolvable:$true] %s15_s11 }
   0x2   :  { %s305_s12 = scalar_lea.vmem %s16_s11, 16  ;;  %p310_p1 = scmp.lt.s32.totalorder %s16_s11, %s16_s11 }
   0x3   :  { %p306_p0 = scmp.ne.s32.totalorder %s16_s11, %s305_s12  ;;  %p311_p2 = scmp.lt.s32.totalorder %s305_s12, %s305_s12 }
   0x5   :  { %p312_p3 = por %p311_p2, %p310_p1 }
   0x7   :  { %p313_p4 = pnand %p312_p3, %p306_p0 }
   0x9   :  { %316 = shalt.err (!%p313_p4)
}
   0xa   :  { %s331_s13 = smov [#allocation2]  }
   0xb   :  { %18 = dma.vmem_to_smem %s16_s11, 16, %s331_s13, [#allocation4]  }
   0xc   :  { %327 = dma.done.wait [#allocation4], 16  }
   0xd   :  { %328 = vsyncadd [#allocation4], 4294967280 }
   0xe   :  { %24 = sfence }
   0xf   :  { %s352_s14 = sld [smem:[#allocation2]]  ;;  %v37_v0 = vlaneseq  ;;  %s354_s15 = sld [smem:[#allocation2 + $0x6]]  ;;  %v332_v20 = vmov 0.0   ;;  %vm110_vm4 = vcmask 130048   ;;  %v299_v49 = vld [vmem:[%s621_s1] ss:$0 sm:$0xff] }
  0x10   :  { %s356_s16 = sld [smem:[#allocation2 + $0x1]]  ;;  %s358_s0 = sld [smem:[#allocation2 + $0x7]] }
  0x11   :  { %v38_v1 = vshrl.u32 %v37_v0, 7  ;;  %v41_v2 = vand.u32 127, %v37_v0  ;;  %s360_s17 = sld [smem:[#allocation2 + $0x2]]  ;;  %s362_s18 = sld [smem:[#allocation2 + $0x8]] }
  0x12   :  { %s405_s19 = sld [smem:[#allocation2 + $0x3]]  ;;  %s407_s20 = sld [smem:[#allocation2 + $0x9]] }
  0x13   :  { %v43_v3 = vshra.s32 %v38_v1, 3  ;;  %v47_v4 = vshra.s32 %v41_v2, 3  ;;  %v53_v5 = vshra.s32 %v38_v1, 2  ;;  %v57_v6 = vshra.s32 %v41_v2, 2  ;;  %s297_s1 = sld [smem:[#allocation2 + $0xa]]  ;;  %s291_s23 = sld [smem:[#allocation2 + $0x4]] }
  0x14   :  { %v65_v7 = vshra.s32 %v38_v1, 1  ;;  %v69_v8 = vshra.s32 %v41_v2, 1  ;;  %v364_v9 = vand.u32 1, %v38_v1  ;;  %v366_v10 = vand.u32 1, %v41_v2  ;;  %s545_s24 = sld [smem:[#allocation2 + $0x5]]  ;;  %s298_s25 = sld [smem:[#allocation2 + $0xb]] }
  0x15   :  { %v368_v11 = vand.u32 1, %v43_v3  ;;  %v370_v12 = vand.u32 1, %v47_v4  ;;  %v372_v13 = vand.u32 1, %v53_v5  ;;  %v374_v14 = vand.u32 1, %v57_v6  ;;  %s317_s29 = scalar_lea.hbm %s622_s2, 16 }
  0x16   :  { %v376_v15 = vand.u32 1, %v65_v7  ;;  %v378_v16 = vand.u32 1, %v69_v8  ;;  %v77_v17 = vstv %s354_s15  ;;  %v80_v18 = vstv %s352_s14  ;;  %p318_p5 = scmp.ne.s32.totalorder %s622_s2, %s317_s29  ;;  %p321_p6 = scmp.lt.u32.totalorder %s317_s29, %s622_s2 }
  0x17   :  { %vm49_vm0 = vcmp.ne.s32.totalorder %v368_v11, %v370_v12  ;;  %vm59_vm1 = vcmp.ne.s32.totalorder %v372_v13, %v374_v14  ;;  %vm88_vm2 = vcmp.eq.s32.totalorder %v364_v9, %v366_v10  ;;  %v90_v19 = vsub.s32 %v364_v9, %v366_v10 }
  0x18   :  { %v51_v21 = vsel %vm49_vm0, 1.0, %v332_v20  ;;  %v61_v22 = vsel %vm59_vm1, 1.0, %v332_v20  ;;  %vm71_vm3 = vcmp.eq.s32.totalorder %v376_v15, %v378_v16  ;;  %v73_v23 = vsub.s32 %v376_v15, %v378_v16  ;;  %p323_p7 = pnand %p321_p6, %p318_p5 }
  0x19   :  { %v63_v24 = vmul.f32 %v61_v22, %v51_v21  ;;  %v396_v25 = vcvt.s32.f32 %v90_v19  ;;  %v94_v26 = vstv %s358_s0  ;;  %v97_v27 = vstv %s356_s16 }
  0x1a   :  { %v75_v28 = vcvt.s32.f32 %v73_v23  ;;  %v39_v29 = vadd.s32 8, %v38_v1  ;;  %vm117_vm5 = vcmp.eq.s32.totalorder %v370_v12, %v368_v11  ;;  %v119_v30 = vsub.s32 %v370_v12, %v368_v11 }
  0x1b   :  { %v95_v31 = vmul.f32 %v94_v26, %v396_v25  ;;  %v123_v32 = vstv %s362_s18  ;;  %v126_v33 = vstv %s360_s17  ;;  %vm129_vm6 = vcmp.eq.s32.totalorder %v374_v14, %v372_v13 }
  0x1c   :  { %v78_v34 = vmul.f32 %v77_v17, %v75_v28  ;;  %v44_v35 = vshra.s32 %v39_v29, 3  ;;  %v54_v36 = vshra.s32 %v39_v29, 2  ;;  %v66_v37 = vshra.s32 %v39_v29, 1 }
  0x1d   :  { %v98_v38 = vsel %vm88_vm2, %v97_v27, %v95_v31  ;;  %v416_v39 = vand.u32 1, %v39_v29  ;;  %v121_v40 = vcvt.s32.f32 %v119_v30  ;;  %v131_v41 = vsub.s32 %v374_v14, %v372_v13 }
  0x1e   :  { %v81_v42 = vsel %vm71_vm3, %v80_v18, %v78_v34  ;;  %v425_v43 = vand.u32 1, %v44_v35  ;;  %v427_v44 = vand.u32 1, %v54_v36  ;;  %v429_v45 = vand.u32 1, %v66_v37 }
  0x1f   :  { %v83_v46 = vmul.f32 %v81_v42, %v63_v24  ;;  %vm89_vm7 = vcmp.eq.s32.totalorder %v416_v39, %v366_v10  ;;  %v91_v47 = vsub.s32 %v416_v39, %v366_v10  ;;  %v124_v48 = vmul.f32 %v123_v32, %v121_v40 }
  0x20   :  { %vm50_vm8 = vcmp.ne.s32.totalorder %v425_v43, %v370_v12  ;;  %vm60_vm9 = vcmp.ne.s32.totalorder %v427_v44, %v374_v14  ;;  %vm72_vm10 = vcmp.eq.s32.totalorder %v429_v45, %v378_v16  ;;  %v74_v50 = vsub.s32 %v429_v45, %v378_v16 }
  0x21   :  { %v100_v51 = vmul.f32 %v98_v38, %v83_v46  ;;  %v52_v52 = vsel %vm50_vm8, 1.0, %v332_v20  ;;  %v62_v53 = vsel %vm60_vm9, 1.0, %v332_v20  ;;  %v93_v54 = vcvt.s32.f32 %v91_v47 }
  0x22   :  { %v64_v55 = vmul.f32 %v62_v53, %v52_v52  ;;  %v76_v56 = vcvt.s32.f32 %v74_v50  ;;  %v127_v57 = vsel %vm117_vm5, %v126_v33, %v124_v48  ;;  %v453_v58 = vcvt.s32.f32 %v131_v41 }
  0x23   :  { %v108_v59 = vmul.f32 %v299_v49, %v100_v51  ;;  %v96_v60 = vmul.f32 %v94_v26, %v93_v54  ;;  %v135_v61 = vstv %s407_s20  ;;  %v138_v62 = vstv %s405_s19 }
  0x24   :  { %v79_v63 = vmul.f32 %v77_v17, %v76_v56  ;;  %v136_v0 = vmul.f32 %v135_v61, %v453_v58  ;;  %vm143_vm11 = vcmp.eq.s32.totalorder %v378_v16, %v376_v15  ;;  %v145_v1 = vxor.u32 %v364_v9, %v376_v15 }
  0x25   :  { %v111_v2 = vsel %vm110_vm4, %v108_v59, 0.0  ;;  %v99_v4 = vsel %vm89_vm7, %v97_v27, %v96_v60  ;;  %v120_v22 = vsub.s32 %v370_v12, %v425_v43  ;;  %v132_v23 = vsub.s32 %v374_v14, %v427_v44 }
  0x26   :  { %112 = vadd.xlane.f32.xlu0 %v111_v2  ;;  %v82_v3 = vsel %vm72_vm10, %v80_v18, %v79_v63  ;;  %v139_v5 = vsel %vm129_vm6, %v138_v62, %v136_v0  ;;  %vm147_vm12 = vcmp.eq.s32.totalorder %v366_v10, %v145_v1  ;;  %v146_v29 = vxor.u32 %v416_v39, %v429_v45 }
  0x27   :  { %v84_v6 = vmul.f32 %v82_v3, %v64_v55  ;;  %v141_v7 = vmul.f32 %v139_v5, %v127_v57  ;;  %vm149_vm13 = vmand %vm143_vm11, %vm147_vm12  ;;  %v122_v24 = vcvt.s32.f32 %v120_v22  ;;  %v484_v26 = vcvt.s32.f32 %v132_v23 }
  0x28   :  { %v151_v8 = vsel %vm149_vm13, 1.0, %v332_v20  ;;  %vm118_vm14 = vcmp.eq.s32.totalorder %v370_v12, %v425_v43  ;;  %vm623_vm15 = vcmp.eq.s32.totalorder %v374_v14, %v427_v44  ;;  %vm144_vm0 = vcmp.eq.s32.totalorder %v378_v16, %v429_v45 }
  0x29   :  { %v101_v17 = vmul.f32 %v99_v4, %v84_v6  ;;  %v153_v18 = vmul.f32 %v151_v8, %v141_v7  ;;  %v125_v27 = vmul.f32 %v123_v32, %v122_v24  ;;  %v137_v28 = vmul.f32 %v135_v61, %v484_v26 }
  0x2a   :  { %vm148_vm1 = vcmp.eq.s32.totalorder %v366_v10, %v146_v29  ;;  %v168_v36 = vxor.u32 %v374_v14, %v370_v12  ;;  %vm166_vm9 = vcmp.eq.s32.totalorder %v368_v11, %v370_v12  ;;  %vm167_vm13 = vcmp.eq.s32.totalorder %v425_v43, %v370_v12 }
  0x2b   :  { %v109_v19 = vmul.f32 %v299_v49, %v101_v17  ;;  %v128_v30 = vsel %vm118_vm14, %v126_v33, %v125_v27  ;;  %v140_v31 = vsel %vm623_vm15, %v138_v62, %v137_v28  ;;  %vm150_vm8 = vmand %vm144_vm0, %vm148_vm1  ;;  %v179_v33 = vstv %s297_s1 }
  0x2c   :  { %v142_v32 = vmul.f32 %v140_v31, %v128_v30  ;;  %v152_v34 = vsel %vm150_vm8, 1.0, %v332_v20  ;;  %vm169_vm12 = vcmp.eq.s32.totalorder %v372_v13, %v168_v36  ;;  %vm170_vm15 = vcmp.eq.s32.totalorder %v427_v44, %v168_v36 }
  0x2d   :  { %v114_v21 = vsel %vm110_vm4, %v109_v19, 0.0  ;;  %vm171_vm1 = vmand %vm166_vm9, %vm169_vm12  ;;  %v524_v38 = vsel %vm71_vm3, 1.0, %v332_v20  ;;  %v180_v40 = vmul.f32 %v179_v33, %v396_v25  ;;  %v534_v41 = vsel %vm72_vm10, 1.0, %v332_v20 }
  0x2e   :  { %115 = vadd.xlane.f32.xlu0 %v114_v21  ;;  %v154_v35 = vmul.f32 %v152_v34, %v142_v32  ;;  %v173_v37 = vsel %vm171_vm1, 1.0, %v332_v20  ;;  %vm172_vm8 = vmand %vm167_vm13, %vm170_vm15  ;;  %v182_v46 = vstv %s291_s23  ;;  %v181_v48 = vmul.f32 %v179_v33, %v93_v54 }
  0x2f   :  { %v177_v42 = vmul.f32 %v524_v38, %v173_v37  ;;  %v174_v47 = vsel %vm172_vm8, 1.0, %v332_v20  ;;  %v183_v25 = vsel %vm88_vm2, %v182_v46, %v180_v40  ;;  %v197_v53 = vstv %s298_s25 }
  0x30   :  { %v178_v49 = vmul.f32 %v534_v41, %v174_v47  ;;  %v184_v51 = vsel %vm89_vm7, %v182_v46, %v181_v48  ;;  %v200_v55 = vstv %s545_s24  ;;  %v195_v54 = vsel %vm117_vm5, 1.0, %v332_v20 }
  0x31   :  { %v185_v50 = vmul.f32 %v183_v25, %v177_v42  ;;  %v198_v56 = vmul.f32 %v197_v53, %v453_v58  ;;  %v205_v59 = vsel %vm143_vm11, 1.0, %v332_v20  ;;  %v199_v22 = vmul.f32 %v197_v53, %v484_v26 }
  0x32   :  { %v186_v52 = vmul.f32 %v184_v51, %v178_v49  ;;  %v196_v23 = vsel %vm118_vm14, 1.0, %v332_v20  ;;  %vm624_vm2 = vcmp.eq.s32.totalorder %v374_v14, %v427_v44  ;;  %vm209_vm3 = vcmp.eq.s32.totalorder %v366_v10, %v364_v9 }
  0x33   :  { %v201_v57 = vsel %vm129_vm6, %v200_v55, %v198_v56  ;;  %v202_v24 = vsel %vm624_vm2, %v200_v55, %v199_v22  ;;  %v206_v28 = vsel %vm144_vm0, 1.0, %v332_v20  ;;  %vm210_vm5 = vcmp.eq.s32.totalorder %v366_v10, %v416_v39 }
  0x34   :  { %v203_v60 = vmul.f32 %v201_v57, %v195_v54  ;;  %v204_v27 = vmul.f32 %v202_v24, %v196_v23  ;;  %v211_v26 = vsel %vm209_vm3, 1.0, %v332_v20  ;;  %v212_v30 = vsel %vm210_vm5, 1.0, %v332_v20 }
  0x35   :  { %v232_v33 = vxor.u32 %v366_v10, %v374_v14  ;;  %vm231_vm6 = vcmp.eq.s32.totalorder %v427_v44, %v374_v14  ;;  %vm230_vm10 = vcmp.eq.s32.totalorder %v372_v13, %v374_v14  ;;  %v227_v10 = vsel %vm167_vm13, 1.0, %v332_v20 }
  0x36   :  { %v207_v61 = vmul.f32 %v205_v59, %v203_v60  ;;  %v208_v29 = vmul.f32 %v206_v28, %v204_v27  ;;  %v226_v46 = vsel %vm166_vm9, 1.0, %v332_v20  ;;  %v229_v48 = vmul.f32 %v227_v10, %v534_v41 }
  0x37   :  { %vm234_vm7 = vcmp.eq.s32.totalorder %v416_v39, %v232_v33  ;;  %vm233_vm11 = vcmp.eq.s32.totalorder %v364_v9, %v232_v33  ;;  %v228_v13 = vmul.f32 %v226_v46, %v524_v38  ;;  %v250_v41 = vmul.u32 2, %v416_v39 }
  0x38   :  { %v213_v31 = vmul.f32 %v211_v26, %v207_v61  ;;  %v214_v34 = vmul.f32 %v212_v30, %v208_v29  ;;  %vm236_vm14 = vmand %vm231_vm6, %vm234_vm7  ;;  %v249_v38 = vmul.u32 2, %v364_v9  ;;  %vm259_vm0 = vcmask 7168  }
  0x39   :  { %vm235_vm15 = vmand %vm230_vm10, %vm233_vm11  ;;  %v238_v14 = vsel %vm236_vm14, 1.0, %v332_v20  ;;  %v252_v54 = vsub.s32 1, %v250_v41 }
  0x3a   :  { %v237_v25 = vsel %vm235_vm15, 1.0, %v332_v20  ;;  %v251_v56 = vsub.s32 1, %v249_v38 }
  0x3b   :  { %v239_v51 = vmul.f32 %v237_v25, %v228_v13  ;;  %v254_v20 = vcvt.s32.f32 %v252_v54 }
  0x3c   :  { %v253_v57 = vcvt.s32.f32 %v251_v56 }
  0xb3   :  { %v113_v62 = vpop.xlane.xlu0 %112 }
  0xb4   :  { %v155_v63 = vmul.f32 %v153_v18, %v113_v62 }
  0xb6   :  { %v157_v2 = vsel %vm110_vm4, %v155_v63, 0.0 }
  0xbb   :  { %v116_v0 = vpop.xlane.xlu0 %115 }
  0xbc   :  { %v156_v1 = vmul.f32 %v154_v35, %v116_v0 }
  0xbe   :  { %v158_v3 = vsel %vm110_vm4, %v156_v1, 0.0 }
  0xbf   :  { %v159_v58 = vadd.f32 %v158_v3, %v157_v2 }
  0xc1   :  { %v160_v4 = vrot.slane %v159_v58, 4 }
  0xc3   :  { %v161_v5 = vadd.f32 %v160_v4, %v159_v58 }
  0xc5   :  { %v162_v6 = vrot.slane %v161_v5, 2 }
  0xc7   :  { %v163_v7 = vadd.f32 %v162_v6, %v161_v5 }
  0xc9   :  { %v164_v8 = vrot.slane %v163_v7, 1 }
  0xcb   :  { %v165_v17 = vadd.f32 %v164_v8, %v163_v7 }
  0xcd   :  { %v187_v19 = vmul.f32 %v185_v50, %v165_v17  ;;  %v188_v15 = vmul.f32 %v186_v52, %v165_v17  ;;  %v240_v50 = vmul.f32 %v238_v14, %v229_v48 }
  0xcf   :  { %v189_v21 = vsel %vm110_vm4, %v187_v19, 0.0  ;;  %v192_v18 = vsel %vm110_vm4, %v188_v15, 0.0 }
  0xd0   :  { %190 = vadd.xlane.f32.xlu1 %v189_v21 }
  0xd4   :  { %193 = vadd.xlane.f32.xlu1 %v192_v18 }
 0x15d   :  { %v191_v32 = vpop.xlane.xlu1 %190 }
 0x15e   :  { %v215_v35 = vmul.f32 %v213_v31, %v191_v32 }
 0x160   :  { %v217_v16 = vsel %vm110_vm4, %v215_v35, 0.0 }
 0x161   :  { %v194_v36 = vpop.xlane.xlu1 %193 }
 0x162   :  { %v216_v37 = vmul.f32 %v214_v34, %v194_v36 }
 0x164   :  { %v218_v45 = vsel %vm110_vm4, %v216_v37, 0.0 }
 0x165   :  { %v219_v40 = vadd.f32 %v218_v45, %v217_v16 }
 0x167   :  { %v220_v42 = vrot.slane %v219_v40, 4 }
 0x169   :  { %v221_v44 = vadd.f32 %v220_v42, %v219_v40 }
 0x16b   :  { %v222_v47 = vrot.slane %v221_v44, 2 }
 0x16d   :  { %v223_v49 = vadd.f32 %v222_v47, %v221_v44 }
 0x16f   :  { %v224_v43 = vrot.slane %v223_v49, 1 }
 0x171   :  { %v225_v52 = vadd.f32 %v224_v43, %v223_v49 }
 0x173   :  { %v242_v53 = vmul.f32 %v240_v50, %v225_v52  ;;  %v241_v55 = vmul.f32 %v239_v51, %v225_v52 }
 0x175   :  { %v246_v11 = vsel %vm110_vm4, %v242_v53, 0.0  ;;  %v243_v12 = vsel %vm110_vm4, %v241_v55, 0.0 }
 0x176   :  { %247 = vadd.xlane.f32.xlu1 %v246_v11  ;;  %244 = vadd.xlane.f32.xlu0 %v243_v12 }
 0x203   :  { %v248_v59 = vpop.xlane.xlu1 %247  ;;  %v245_v60 = vpop.xlane.xlu0 %244 }
 0x204   :  { %v256_v61 = vmul.f32 %v248_v59, %v248_v59  ;;  %v255_v62 = vmul.f32 %v245_v60, %v245_v60 }
 0x206   :  { %v258_v63 = vmul.f32 %v256_v61, %v254_v20  ;;  %v257_v0 = vmul.f32 %v255_v62, %v253_v57 }
 0x208   :  { %v260_v1 = vsel %vm259_vm0, %v257_v0, 0.0  ;;  %v261_v2 = vsel %vm259_vm0, %v258_v63, 0.0 }
 0x209   :  { %v262_v3 = vadd.f32 %v261_v2, %v260_v1 }
 0x20b   :  { %263 = vadd.xlane.f32.xlu0 %v262_v3 }
 0x298   :  { %v264_v58 = vpop.xlane.xlu0 %263 }
 0x299   :  { %v265_v4 = vrot.slane %v264_v58, 4 }
 0x29b   :  { %v266_v39 = vadd.f32 %v265_v4, %v264_v58 }
 0x29d   :  { %v267_v5 = vrot.slane %v266_v39, 2 }
 0x29f   :  { %v268_v9 = vadd.f32 %v267_v5, %v266_v39 }
 0x2a1   :  { %v269_v6 = vrot.slane %v268_v9, 1 }
 0x2a3   :  { %v270_v7 = vadd.f32 %v269_v6, %v268_v9 }
 0x2a5   :  { %300 = vpush %v270_v7 }
 0x2d6   :  { %s301_s26 = spop %300 }
 0x2d7   :  { %273 = sst [smem:[#allocation5]] %s301_s26 }
 0x2d8   :  { %326 = shalt.err (!%p323_p7)
}
 0x2d9   :  { %s333_s6 = smov [#allocation5]  }
 0x2da   :  { %281 = dma.smem_to_hbm %s333_s6, 16, %s622_s2, [#allocation3]  }
 0x2db   :  { %329 = dma.done.wait [#allocation3], 16  }
 0x2dc   :  { %330 = vsyncadd [#allocation3], 4294967280 }
 0x2dd   :  { %285 = sfence }
 0x2de   :  { %286 = vsyncpa [#allocation3], 1 }
 0x2df   :  { %287 = vsyncpa [#allocation4], 1 }

</bundles_post_ra>
